<compile_context>
chip_gen: v7x
topology: tpu7x:2x2x1
jax: 0.10.0
libtpu: 0.0.40
codegen_flags: <defaults>
</compile_context>

<pallas_src>
import functools

import jax
import jax.numpy as jnp
from jax.experimental import pallas as pl
from jax.experimental.pallas import tpu as pltpu


def _log_sigmoid(x):
    # matches torch.nn.functional.logsigmoid (numerically stable form)
    return jnp.minimum(x, 0.0) - jnp.log1p(jnp.exp(-jnp.abs(x)))


def _round_up(v, m):
    return (v + m - 1) // m * m


def _compose_causal(outer, inner):
    """Compose two causal lag-major filters (inner applied first, then outer).

    outer: (Co, Cm, Lo), inner: (Cm, Ci, Li)  ->  (Co, Ci, Lo + Li - 1)
    out[o, i, J] = sum_m sum_{jo+ji=J} outer[o, m, jo] * inner[m, i, ji]
    """
    co, cm, lo = outer.shape
    cm2, ci, li = inner.shape
    assert cm == cm2
    L = lo + li - 1
    rel = jnp.arange(L)[None, :] - jnp.arange(li)[:, None]            # (li, L)
    valid = (rel >= 0) & (rel < lo)
    toep = jnp.where(valid[None, None],
                     outer[:, :, jnp.clip(rel, 0, lo - 1)], 0.0)      # (co, cm, li, L)
    return jnp.einsum('omjl,mij->oil', toep, inner)


def ifdnn_kernel(x_ref, w_ref, bias_ref, head_ref,
                 v_ref, spike_ref,
                 ybuf,
                 *, lp, t_tile, hist_pad, w_resident):
    Lp, Tt, Kp = lp, t_tile, hist_pad
    off = Kp - (Lp - 1)                     # first live history column
    t = pl.program_id(1)
    n = pl.program_id(2)
    n_last = pl.num_programs(2) - 1

    # Causal state: zero the history at the start of each batch row.
    @pl.when((t == 0) & (n == 0))
    def _():
        ybuf[:, :Kp] = jnp.zeros((Lp, Kp), jnp.float32)

    # Bulk work: one stacked-lags MXU matmul per synapse chunk, accumulated in
    # f32 VMEM scratch across the (innermost) synapse grid axis.
    # Row r of the composed weight slab corresponds to lag (Lp-1-r).
    w = w_ref[n] if w_resident else w_ref[0]                         # (Lp, Nt)
    contrib = jnp.dot(w, x_ref[0], preferred_element_type=jnp.float32)  # (Lp, Tt)

    @pl.when(n == 0)
    def _():
        ybuf[:, Kp:] = contrib

    @pl.when(n > 0)
    def _():
        ybuf[:, Kp:] += contrib

    # Last synapse chunk: shifted sum over the Lp lag rows (+ bias ramp),
    # apply the two 1x1 heads, carry the causal history to the next time tile.
    @pl.when(n == n_last)
    def _():
        y = bias_ref[...]                                            # (1, Tt) f32
        # NOTE: static unroll (Lp iters).  Only one loop remains after
        # composing the conv stack; switch to a fori_loop / strided-roll
        # reduction if compile time at K=100 (Lp~304) becomes an issue.
        for r in range(Lp):
            y = y + ybuf[r:r + 1, off + r:off + r + Tt]

        sw, sb = head_ref[0], head_ref[1]
        vw, vb = head_ref[2], head_ref[3]
        v_ref[0] = (y * vw + vb).astype(v_ref.dtype)
        spike_ref[0] = _log_sigmoid(y * sw + sb).astype(spike_ref.dtype)

        # Carry the last Lp-1 columns into the next time tile's history.
        ybuf[:, off:Kp] = ybuf[:, Kp + Tt - (Lp - 1):]


def ifdnn_forward(x, params, win_size, *, n_tile=2048, t_tile=1024,
                  compute_dtype=jnp.bfloat16,
                  w_resident_max_bytes=48 * 1024 * 1024):
    """x: (B, N_syn, T) float32.  Returns (v_out, spike_out), each (B, 1, T) f32."""
    B, N_syn, T = x.shape
    K = win_size
    assert K >= 1

    L = 3 * K - 2                              # composed causal filter length
    Lp = _round_up(L, 8)                       # padded stacked-row count
    Kp = _round_up(Lp - 1, 128)                # padded history width (lanes)

    n_tile = _round_up(n_tile, 128)
    t_tile = _round_up(t_tile, 128)
    Tt = max(min(t_tile, _round_up(T, 128)), Kp)     # time tile (>= history)
    Nt = min(n_tile, _round_up(N_syn, 128))          # synapse tile
    T_pad = _round_up(T, Tt)
    N_pad = _round_up(N_syn, Nt)
    NB = N_pad // Nt

    f32 = jnp.float32
    # Lag-major copies of the three conv kernels (lag 0 = current timestep).
    f1 = params["w1"][:, :, ::-1].astype(f32)        # (8, N_syn, K)
    f2 = params["w2"][:, :, ::-1].astype(f32)        # (8, 8, K)
    f3 = params["w3"][:, :, ::-1].astype(f32)        # (1, 8, K)
    b1 = params["b1"].astype(f32)                    # (8,)
    b2 = params["b2"].astype(f32)                    # (8,)
    b3 = params["b3"].astype(f32)                    # (1,)

    # Compose conv3 o conv2 (tiny), then o conv1 (one einsum over N_syn).
    g23 = _compose_causal(f3, f2)                    # (1, 8, 2K-1)
    F = _compose_causal(g23, f1)[0]                  # (N_syn, 3K-2)

    # Pad synapse / lag axes, re-layout to stacked rows (row r <-> lag Lp-1-r)
    # and block along the synapse axis so each (Lp, Nt) block is contiguous.
    F = jnp.pad(F, ((0, N_pad - N_syn), (0, Lp - L)))
    w_stk = jnp.flip(F, axis=-1).T                   # (Lp, N_pad)
    w_blk = w_stk.reshape(Lp, NB, Nt).transpose(1, 0, 2)   # (NB, Lp, Nt)
    w_blk = w_blk.astype(compute_dtype)

    # Exact zero-input response: b1/b2 propagate through the later causal
    # convs as a ramp for the first 2(K-1) steps, then saturate.
    t_idx = jnp.arange(T_pad)
    cum3 = jnp.cumsum(f3[0], axis=-1)                # (8, K)
    cum23 = jnp.cumsum(g23[0], axis=-1)              # (8, 2K-1)
    bias = (b3[0]
            + b2 @ cum3[:, jnp.minimum(t_idx, K - 1)]
            + b1 @ cum23[:, jnp.minimum(t_idx, 2 * K - 2)])
    bias = bias.reshape(1, T_pad).astype(f32)

    # 1x1 head scalars live in SMEM.
    head = jnp.stack([params["spike_w"].reshape(()),
                      params["spike_b"].reshape(()),
                      params["v_w"].reshape(()),
                      params["v_b"].reshape(())]).astype(f32)

    x_p = jnp.pad(x, ((0, 0), (0, N_pad - N_syn), (0, T_pad - T)))
    x_p = x_p.astype(compute_dtype)

    # Keep the composed weight slab fully VMEM-resident when it fits (it is
    # ~18 MB bf16 at production size); otherwise stream contiguous blocks.
    itemsize = jnp.dtype(compute_dtype).itemsize
    w_bytes = NB * Lp * Nt * itemsize
    w_resident = w_bytes <= w_resident_max_bytes
    if w_resident:
        w_spec = pl.BlockSpec(memory_space=pltpu.MemorySpace.VMEM)
        w_vmem = w_bytes
    else:
        w_spec = pl.BlockSpec((1, Lp, Nt), lambda b, t, n: (n, 0, 0))
        w_vmem = 2 * Lp * Nt * itemsize          # double buffered block

    vmem_need = (w_vmem
                 + 2 * Nt * Tt * itemsize        # x tile, double buffered
                 + Lp * (Kp + Tt) * 4            # stacked-lag accumulator
                 + 2 * Tt * 4                    # bias blocks
                 + 4 * Tt * 4)                   # output blocks
    vmem_limit = int(min(vmem_need + (32 << 20), 127 << 20))

    grid = (B, T_pad // Tt, NB)
    kernel = functools.partial(ifdnn_kernel, lp=Lp, t_tile=Tt, hist_pad=Kp,
                               w_resident=w_resident)

    v_out, spike_out = pl.pallas_call(
        kernel,
        out_shape=(jax.ShapeDtypeStruct((B, 1, T_pad), jnp.float32),
                   jax.ShapeDtypeStruct((B, 1, T_pad), jnp.float32)),
        grid_spec=pltpu.PrefetchScalarGridSpec(
            num_scalar_prefetch=0,
            grid=grid,
            in_specs=[
                pl.BlockSpec((1, Nt, Tt), lambda b, t, n: (b, n, t)),   # x tile
                w_spec,                                                 # composed weights
                pl.BlockSpec((1, Tt), lambda b, t, n: (0, t)),          # bias ramp
                pl.BlockSpec(memory_space=pltpu.MemorySpace.SMEM),      # head scalars
            ],
            out_specs=[pl.BlockSpec((1, 1, Tt), lambda b, t, n: (b, 0, t)),
                       pl.BlockSpec((1, 1, Tt), lambda b, t, n: (b, 0, t))],
            scratch_shapes=[
                pltpu.VMEM((Lp, Kp + Tt), jnp.float32),   # lag accumulator + history
            ],
        ),
        compiler_params=pltpu.CompilerParams(
            dimension_semantics=("parallel", "arbitrary", "arbitrary"),
            vmem_limit_bytes=vmem_limit),
    )(x_p, w_blk, bias, head)
    return v_out[:, :, :T], spike_out[:, :, :T]


def ifdnn_reference(x, params, win_size):
    """Pure-JAX reference of the PyTorch forward (for correctness checks)."""
    K = win_size

    def causal_conv(h, w, b):
        B, Cin, T = h.shape
        hp = jnp.pad(h, ((0, 0), (0, 0), (K - 1, 0)))
        out = jnp.zeros((B, w.shape[0], T), jnp.float32) + b[None, :, None]
        for k in range(K):
            out = out + jnp.einsum('oi,bit->bot', w[:, :, k], hp[:, :, k:k + T])
        return out

    out = causal_conv(x, params["w1"], params["b1"])
    out = causal_conv(out, params["w2"], params["b2"])
    out = causal_conv(out, params["w3"], params["b3"])
    spike = _log_sigmoid(out * params["spike_w"][0, 0, 0] + params["spike_b"][0])
    v = out * params["v_w"][0, 0, 0] + params["v_b"][0]
    return v, spike


def init_params(key, n_syn, win_size):
    """Deterministic PyTorch-Conv1d-style init (uniform +/- 1/sqrt(fan_in))."""
    ks = jax.random.split(key, 10)

    def u(k, shape, fan_in):
        bound = 1.0 / jnp.sqrt(jnp.asarray(fan_in, jnp.float32))
        return jax.random.uniform(k, shape, jnp.float32, -bound, bound)

    return {
        "w1": u(ks[0], (8, n_syn, win_size), n_syn * win_size),
        "b1": u(ks[1], (8,), n_syn * win_size),
        "w2": u(ks[2], (8, 8, win_size), 8 * win_size),
        "b2": u(ks[3], (8,), 8 * win_size),
        "w3": u(ks[4], (1, 8, win_size), 8 * win_size),
        "b3": u(ks[5], (1,), 8 * win_size),
        "spike_w": u(ks[6], (1, 1, 1), 1),
        "spike_b": u(ks[7], (1,), 1),
        "v_w": u(ks[8], (1, 1, 1), 1),
        "v_b": u(ks[9], (1,), 1),
    }


if __name__ == "__main__":
    # Small shapes consistent with the module (real model: N_syn=30076, win=100).
    # Non-(8,128)-aligned N_syn / T to exercise the wrapper padding, and tiles
    # small enough to exercise the synapse reduction and the causal time carry:
    # grid = (B=2, T_tiles=2, N_tiles=3).
    B, N_SYN, T, WIN = 2, 300, 200, 8

    key = jax.random.PRNGKey(0)
    k_x, k_p = jax.random.split(key)
    x = jax.random.normal(k_x, (B, N_SYN, T), dtype=jnp.float32)
    params = init_params(k_p, N_SYN, WIN)

    v_ref, spike_ref = ifdnn_reference(x, params, WIN)

    # f32 path with VMEM-resident composed weights: tight check vs. reference.
    fwd32 = jax.jit(functools.partial(ifdnn_forward, win_size=WIN,
                                      n_tile=128, t_tile=128,
                                      compute_dtype=jnp.float32))
    v32, s32 = fwd32(x, params)
    jax.block_until_ready((v32, s32))
    assert v32.shape == (B, 1, T) and s32.shape == (B, 1, T)
    assert jnp.allclose(v32, v_ref, atol=2e-3, rtol=2e-3)
    assert jnp.allclose(s32, spike_ref, atol=2e-3, rtol=2e-3)

    # bf16 path (production default dtype) with the streaming-weight fallback
    # forced, so both weight paths are validated.
    fwd16 = jax.jit(functools.partial(ifdnn_forward, win_size=WIN,
                                      n_tile=128, t_tile=128,
                                      w_resident_max_bytes=0))
    v16, s16 = fwd16(x, params)
    jax.block_until_ready((v16, s16))
    assert v16.shape == (B, 1, T) and s16.shape == (B, 1, T)
    assert jnp.allclose(v16, v_ref, atol=5e-2, rtol=5e-2)
    assert jnp.allclose(s16, spike_ref, atol=5e-2, rtol=5e-2)

    print("KERNEL_OK")
</pallas_src>

<mosaic_0001>
module attributes {stable_mosaic.version = 11 : i64} {
  func.func @ifdnn_kernel(%arg0: i32, %arg1: i32, %arg2: i32, %arg3: memref<1x128x128xf32, #tpu.memory_space<vmem>>, %arg4: memref<3x24x128xf32, #tpu.memory_space<vmem>>, %arg5: memref<1x128xf32, #tpu.memory_space<vmem>>, %arg6: memref<4xf32, #tpu.memory_space<smem>>, %arg7: memref<1x1x128xf32, #tpu.memory_space<vmem>>, %arg8: memref<1x1x128xf32, #tpu.memory_space<vmem>>, %arg9: memref<24x256xf32, #tpu.memory_space<vmem>>) attributes {dimension_semantics = [#tpu.dimension_semantics<parallel>, #tpu.dimension_semantics<arbitrary>, #tpu.dimension_semantics<arbitrary>], iteration_bounds = array<i64: 2, 2, 3>, scalar_prefetch = 0 : i64, scratch_operands = 1 : i64, tpu.core_type = #tpu.core_type<tc>, window_params = [{transform_indices = @transform_0, window_bounds = array<i64: 1, 128, 128>}, {pipeline_mode = #tpu.pipeline_mode<synchronous>, transform_indices = @transform_1, window_bounds = array<i64: 3, 24, 128>}, {transform_indices = @transform_2, window_bounds = array<i64: 1, 128>}, {transform_indices = @transform_3, window_bounds = array<i64: 4>}, {transform_indices = @transform_4, window_bounds = array<i64: 1, 1, 128>}, {transform_indices = @transform_5, window_bounds = array<i64: 1, 1, 128>}]} {
    %c0_i32 = arith.constant 0 : i32
    %0 = arith.cmpi eq, %arg1, %c0_i32 : i32
    %c0_i32_0 = arith.constant 0 : i32
    %1 = arith.cmpi eq, %arg2, %c0_i32_0 : i32
    %2 = arith.andi %0, %1 : i1
    %3 = arith.extui %2 : i1 to i32
    %c0_i32_1 = arith.constant 0 : i32
    %4 = arith.cmpi ne, %3, %c0_i32_1 : i32
    scf.if %4 {
      %cst_11 = arith.constant 0.000000e+00 : f32
      %20 = vector.broadcast %cst_11 : f32 to vector<24x128xf32>
      %c0_12 = arith.constant 0 : index
      %c0_13 = arith.constant 0 : index
      %21 = vector.load %arg9[%c0_12, %c0_13] : memref<24x256xf32, #tpu.memory_space<vmem>>, vector<24x128xf32>
      tpu.vector_store %arg9[%c0_12, %c0_13], %20 {strides = array<i32>} : memref<24x256xf32, #tpu.memory_space<vmem>>, vector<24x128xf32>,
    } else {
    }
    %5 = arith.index_cast %arg2 : i32 to index
    %c0 = arith.constant 0 : index
    %c0_2 = arith.constant 0 : index
    %6 = vector.load %arg4[%5, %c0, %c0_2] : memref<3x24x128xf32, #tpu.memory_space<vmem>>, vector<1x24x128xf32>
    %7 = vector.shape_cast %6 : vector<1x24x128xf32> to vector<24x128xf32>
    %c0_3 = arith.constant 0 : index
    %c0_4 = arith.constant 0 : index
    %c0_5 = arith.constant 0 : index
    %8 = vector.load %arg3[%c0_3, %c0_4, %c0_5] : memref<1x128x128xf32, #tpu.memory_space<vmem>>, vector<1x128x128xf32>
    %9 = vector.shape_cast %8 : vector<1x128x128xf32> to vector<128x128xf32>
    %cst = arith.constant dense<0.000000e+00> : vector<24x128xf32>
    %10 = tpu.matmul %7, %9, %cst {dimension_numbers = #tpu.dot_dimension_numbers<[1], [0], [0], [1], [0, 0, 1, 1], [], []>} : vector<24x128xf32>, vector<128x128xf32>, vector<24x128xf32> -> vector<24x128xf32>
    %c0_i32_6 = arith.constant 0 : i32
    %11 = arith.cmpi eq, %arg2, %c0_i32_6 : i32
    %12 = arith.extui %11 : i1 to i32
    %c0_i32_7 = arith.constant 0 : i32
    %13 = arith.cmpi ne, %12, %c0_i32_7 : i32
    scf.if %13 {
      %c0_11 = arith.constant 0 : index
      %c128 = arith.constant 128 : index
      %20 = vector.load %arg9[%c0_11, %c128] : memref<24x256xf32, #tpu.memory_space<vmem>>, vector<24x128xf32>
      tpu.vector_store %arg9[%c0_11, %c128], %10 {strides = array<i32>} : memref<24x256xf32, #tpu.memory_space<vmem>>, vector<24x128xf32>,
    } else {
    }
    %c0_i32_8 = arith.constant 0 : i32
    %14 = arith.cmpi sgt, %arg2, %c0_i32_8 : i32
    %15 = arith.extui %14 : i1 to i32
    %c0_i32_9 = arith.constant 0 : i32
    %16 = arith.cmpi ne, %15, %c0_i32_9 : i32
    scf.if %16 {
      %c0_11 = arith.constant 0 : index
      %c128 = arith.constant 128 : index
      %20 = vector.load %arg9[%c0_11, %c128] : memref<24x256xf32, #tpu.memory_space<vmem>>, vector<24x128xf32>
      %21 = arith.addf %20, %10 : vector<24x128xf32>
      %c0_12 = arith.constant 0 : index
      %c128_13 = arith.constant 128 : index
      %22 = vector.load %arg9[%c0_12, %c128_13] : memref<24x256xf32, #tpu.memory_space<vmem>>, vector<24x128xf32>
      tpu.vector_store %arg9[%c0_12, %c128_13], %21 {strides = array<i32>} : memref<24x256xf32, #tpu.memory_space<vmem>>, vector<24x128xf32>,
    } else {
    }
    %c2_i32 = arith.constant 2 : i32
    %17 = arith.cmpi eq, %arg2, %c2_i32 : i32
    %18 = arith.extui %17 : i1 to i32
    %c0_i32_10 = arith.constant 0 : i32
    %19 = arith.cmpi ne, %18, %c0_i32_10 : i32
    scf.if %19 {
      %c0_11 = arith.constant 0 : index
      %c0_12 = arith.constant 0 : index
      %20 = vector.load %arg5[%c0_11, %c0_12] : memref<1x128xf32, #tpu.memory_space<vmem>>, vector<1x128xf32>
      %c0_13 = arith.constant 0 : index
      %c105 = arith.constant 105 : index
      %21 = vector.load %arg9[%c0_13, %c105] : memref<24x256xf32, #tpu.memory_space<vmem>>, vector<1x128xf32>
      %22 = arith.addf %20, %21 : vector<1x128xf32>
      %c1 = arith.constant 1 : index
      %c106 = arith.constant 106 : index
      %23 = vector.load %arg9[%c1, %c106] : memref<24x256xf32, #tpu.memory_space<vmem>>, vector<1x128xf32>
      %24 = arith.addf %22, %23 : vector<1x128xf32>
      %c2 = arith.constant 2 : index
      %c107 = arith.constant 107 : index
      %25 = vector.load %arg9[%c2, %c107] : memref<24x256xf32, #tpu.memory_space<vmem>>, vector<1x128xf32>
      %26 = arith.addf %24, %25 : vector<1x128xf32>
      %c3 = arith.constant 3 : index
      %c108 = arith.constant 108 : index
      %27 = vector.load %arg9[%c3, %c108] : memref<24x256xf32, #tpu.memory_space<vmem>>, vector<1x128xf32>
      %28 = arith.addf %26, %27 : vector<1x128xf32>
      %c4 = arith.constant 4 : index
      %c109 = arith.constant 109 : index
      %29 = vector.load %arg9[%c4, %c109] : memref<24x256xf32, #tpu.memory_space<vmem>>, vector<1x128xf32>
      %30 = arith.addf %28, %29 : vector<1x128xf32>
      %c5 = arith.constant 5 : index
      %c110 = arith.constant 110 : index
      %31 = vector.load %arg9[%c5, %c110] : memref<24x256xf32, #tpu.memory_space<vmem>>, vector<1x128xf32>
      %32 = arith.addf %30, %31 : vector<1x128xf32>
      %c6 = arith.constant 6 : index
      %c111 = arith.constant 111 : index
      %33 = vector.load %arg9[%c6, %c111] : memref<24x256xf32, #tpu.memory_space<vmem>>, vector<1x128xf32>
      %34 = arith.addf %32, %33 : vector<1x128xf32>
      %c7 = arith.constant 7 : index
      %c112 = arith.constant 112 : index
      %35 = vector.load %arg9[%c7, %c112] : memref<24x256xf32, #tpu.memory_space<vmem>>, vector<1x128xf32>
      %36 = arith.addf %34, %35 : vector<1x128xf32>
      %c8 = arith.constant 8 : index
      %c113 = arith.constant 113 : index
      %37 = vector.load %arg9[%c8, %c113] : memref<24x256xf32, #tpu.memory_space<vmem>>, vector<1x128xf32>
      %38 = arith.addf %36, %37 : vector<1x128xf32>
      %c9 = arith.constant 9 : index
      %c114 = arith.constant 114 : index
      %39 = vector.load %arg9[%c9, %c114] : memref<24x256xf32, #tpu.memory_space<vmem>>, vector<1x128xf32>
      %40 = arith.addf %38, %39 : vector<1x128xf32>
      %c10 = arith.constant 10 : index
      %c115 = arith.constant 115 : index
      %41 = vector.load %arg9[%c10, %c115] : memref<24x256xf32, #tpu.memory_space<vmem>>, vector<1x128xf32>
      %42 = arith.addf %40, %41 : vector<1x128xf32>
      %c11 = arith.constant 11 : index
      %c116 = arith.constant 116 : index
      %43 = vector.load %arg9[%c11, %c116] : memref<24x256xf32, #tpu.memory_space<vmem>>, vector<1x128xf32>
      %44 = arith.addf %42, %43 : vector<1x128xf32>
      %c12 = arith.constant 12 : index
      %c117 = arith.constant 117 : index
      %45 = vector.load %arg9[%c12, %c117] : memref<24x256xf32, #tpu.memory_space<vmem>>, vector<1x128xf32>
      %46 = arith.addf %44, %45 : vector<1x128xf32>
      %c13 = arith.constant 13 : index
      %c118 = arith.constant 118 : index
      %47 = vector.load %arg9[%c13, %c118] : memref<24x256xf32, #tpu.memory_space<vmem>>, vector<1x128xf32>
      %48 = arith.addf %46, %47 : vector<1x128xf32>
      %c14 = arith.constant 14 : index
      %c119 = arith.constant 119 : index
      %49 = vector.load %arg9[%c14, %c119] : memref<24x256xf32, #tpu.memory_space<vmem>>, vector<1x128xf32>
      %50 = arith.addf %48, %49 : vector<1x128xf32>
      %c15 = arith.constant 15 : index
      %c120 = arith.constant 120 : index
      %51 = vector.load %arg9[%c15, %c120] : memref<24x256xf32, #tpu.memory_space<vmem>>, vector<1x128xf32>
      %52 = arith.addf %50, %51 : vector<1x128xf32>
      %c16 = arith.constant 16 : index
      %c121 = arith.constant 121 : index
      %53 = vector.load %arg9[%c16, %c121] : memref<24x256xf32, #tpu.memory_space<vmem>>, vector<1x128xf32>
      %54 = arith.addf %52, %53 : vector<1x128xf32>
      %c17 = arith.constant 17 : index
      %c122 = arith.constant 122 : index
      %55 = vector.load %arg9[%c17, %c122] : memref<24x256xf32, #tpu.memory_space<vmem>>, vector<1x128xf32>
      %56 = arith.addf %54, %55 : vector<1x128xf32>
      %c18 = arith.constant 18 : index
      %c123 = arith.constant 123 : index
      %57 = vector.load %arg9[%c18, %c123] : memref<24x256xf32, #tpu.memory_space<vmem>>, vector<1x128xf32>
      %58 = arith.addf %56, %57 : vector<1x128xf32>
      %c19 = arith.constant 19 : index
      %c124 = arith.constant 124 : index
      %59 = vector.load %arg9[%c19, %c124] : memref<24x256xf32, #tpu.memory_space<vmem>>, vector<1x128xf32>
      %60 = arith.addf %58, %59 : vector<1x128xf32>
      %c20 = arith.constant 20 : index
      %c125 = arith.constant 125 : index
      %61 = vector.load %arg9[%c20, %c125] : memref<24x256xf32, #tpu.memory_space<vmem>>, vector<1x128xf32>
      %62 = arith.addf %60, %61 : vector<1x128xf32>
      %c21 = arith.constant 21 : index
      %c126 = arith.constant 126 : index
      %63 = vector.load %arg9[%c21, %c126] : memref<24x256xf32, #tpu.memory_space<vmem>>, vector<1x128xf32>
      %64 = arith.addf %62, %63 : vector<1x128xf32>
      %c22 = arith.constant 22 : index
      %c127 = arith.constant 127 : index
      %65 = vector.load %arg9[%c22, %c127] : memref<24x256xf32, #tpu.memory_space<vmem>>, vector<1x128xf32>
      %66 = arith.addf %64, %65 : vector<1x128xf32>
      %c23 = arith.constant 23 : index
      %c128 = arith.constant 128 : index
      %67 = vector.load %arg9[%c23, %c128] : memref<24x256xf32, #tpu.memory_space<vmem>>, vector<1x128xf32>
      %68 = arith.addf %66, %67 : vector<1x128xf32>
      %c0_14 = arith.constant 0 : index
      %69 = memref.load %arg6[%c0_14] : memref<4xf32, #tpu.memory_space<smem>>
      %c1_15 = arith.constant 1 : index
      %70 = memref.load %arg6[%c1_15] : memref<4xf32, #tpu.memory_space<smem>>
      %c2_16 = arith.constant 2 : index
      %71 = memref.load %arg6[%c2_16] : memref<4xf32, #tpu.memory_space<smem>>
      %c3_17 = arith.constant 3 : index
      %72 = memref.load %arg6[%c3_17] : memref<4xf32, #tpu.memory_space<smem>>
      %73 = vector.broadcast %71 : f32 to vector<1x128xf32>
      %74 = arith.mulf %68, %73 : vector<1x128xf32>
      %75 = vector.broadcast %72 : f32 to vector<1x128xf32>
      %76 = arith.addf %74, %75 : vector<1x128xf32>
      %c0_18 = arith.constant 0 : index
      %c0_19 = arith.constant 0 : index
      %c0_20 = arith.constant 0 : index
      %77 = vector.load %arg7[%c0_18, %c0_19, %c0_20] : memref<1x1x128xf32, #tpu.memory_space<vmem>>, vector<1x1x128xf32>
      %78 = vector.shape_cast %77 : vector<1x1x128xf32> to vector<1x128xf32>
      %79 = vector.shape_cast %76 : vector<1x128xf32> to vector<1x1x128xf32>
      tpu.vector_store %arg7[%c0_18, %c0_19, %c0_20], %79 {strides = array<i32>} : memref<1x1x128xf32, #tpu.memory_space<vmem>>, vector<1x1x128xf32>,
      %80 = vector.broadcast %69 : f32 to vector<1x128xf32>
      %81 = arith.mulf %68, %80 : vector<1x128xf32>
      %82 = vector.broadcast %70 : f32 to vector<1x128xf32>
      %83 = arith.addf %81, %82 : vector<1x128xf32>
      %cst_21 = arith.constant 0.000000e+00 : f32
      %84 = vector.broadcast %cst_21 : f32 to vector<1x128xf32>
      %85 = arith.minimumf %83, %84 : vector<1x128xf32>
      %86 = math.absf %83 : vector<1x128xf32>
      %cst_22 = arith.constant 0.000000e+00 : f32
      %87 = vector.broadcast %cst_22 : f32 to vector<1x128xf32>
      %88 = arith.subf %87, %86 : vector<1x128xf32>
      %89 = math.exp %88 : vector<1x128xf32>
      %90 = math.log1p %89 : vector<1x128xf32>
      %91 = arith.subf %85, %90 : vector<1x128xf32>
      %c0_23 = arith.constant 0 : index
      %c0_24 = arith.constant 0 : index
      %c0_25 = arith.constant 0 : index
      %92 = vector.load %arg8[%c0_23, %c0_24, %c0_25] : memref<1x1x128xf32, #tpu.memory_space<vmem>>, vector<1x1x128xf32>
      %93 = vector.shape_cast %92 : vector<1x1x128xf32> to vector<1x128xf32>
      %94 = vector.shape_cast %91 : vector<1x128xf32> to vector<1x1x128xf32>
      tpu.vector_store %arg8[%c0_23, %c0_24, %c0_25], %94 {strides = array<i32>} : memref<1x1x128xf32, #tpu.memory_space<vmem>>, vector<1x1x128xf32>,
      %c0_26 = arith.constant 0 : index
      %c233 = arith.constant 233 : index
      %95 = vector.load %arg9[%c0_26, %c233] : memref<24x256xf32, #tpu.memory_space<vmem>>, vector<24x23xf32>
      %c0_27 = arith.constant 0 : index
      %c105_28 = arith.constant 105 : index
      %96 = vector.load %arg9[%c0_27, %c105_28] : memref<24x256xf32, #tpu.memory_space<vmem>>, vector<24x23xf32>
      tpu.vector_store %arg9[%c0_27, %c105_28], %95 {strides = array<i32>} : memref<24x256xf32, #tpu.memory_space<vmem>>, vector<24x23xf32>,
    } else {
    }
    return
  }
  func.func @transform_0(%arg0: i32, %arg1: i32, %arg2: i32) -> (i32, i32, i32) {
    %c0_i32 = arith.constant 0 : i32
    return %arg0, %arg2, %arg1 : i32, i32, i32
  }
  func.func @transform_1(%arg0: i32, %arg1: i32, %arg2: i32) -> (i32, i32, i32) {
    %c0_i32 = arith.constant 0 : i32
    %c0_i32_0 = arith.constant 0 : i32
    %c0_i32_1 = arith.constant 0 : i32
    %c0_i32_2 = arith.constant 0 : i32
    return %c0_i32, %c0_i32_0, %c0_i32_1 : i32, i32, i32
  }
  func.func @transform_2(%arg0: i32, %arg1: i32, %arg2: i32) -> (i32, i32) {
    %c0_i32 = arith.constant 0 : i32
    %c0_i32_0 = arith.constant 0 : i32
    return %c0_i32, %arg1 : i32, i32
  }
  func.func @transform_3(%arg0: i32, %arg1: i32, %arg2: i32) -> i32 {
    %c0_i32 = arith.constant 0 : i32
    %c0_i32_0 = arith.constant 0 : i32
    return %c0_i32 : i32
  }
  func.func @transform_4(%arg0: i32, %arg1: i32, %arg2: i32) -> (i32, i32, i32) {
    %c0_i32 = arith.constant 0 : i32
    %c0_i32_0 = arith.constant 0 : i32
    return %arg0, %c0_i32, %arg1 : i32, i32, i32
  }
  func.func @transform_5(%arg0: i32, %arg1: i32, %arg2: i32) -> (i32, i32, i32) {
    %c0_i32 = arith.constant 0 : i32
    %c0_i32_0 = arith.constant 0 : i32
    return %arg0, %c0_i32, %arg1 : i32, i32, i32
  }
}

</mosaic_0001>

<bundles_post_ra>
// kernel: ifdnn_forward.1
= control target key start
LH: loop header
LB: loop body
LE: loop exit
PB: predicated region body
PF: predicated region fallthrough
CT: control target
= control target key end

     0   :  { %s2219_s0 = inlined_call_operand.vmem [shape: f32[2,384,256], index: 0, kind: input, shape index: {}]   ;;  %s2220_s1 = inlined_call_operand.vmem [shape: f32[3,24,128], index: 1, kind: input, shape index: {}]   ;;  %s2221_s2 = inlined_call_operand.vmem [shape: f32[1,256], index: 2, kind: input, shape index: {}]   ;;  %s2222_s3 = inlined_call_operand.vmem [shape: f32[4], index: 3, kind: input, shape index: {}]   ;;  %s2223_s4 = inlined_call_operand.hbm [shape: f32[2,1,256], index: 4, kind: output, shape index: {0}]   ;;  %s2224_s5 = inlined_call_operand.hbm [shape: f32[2,1,256], index: 5, kind: output, shape index: {1}]  }
   0x1   :  { %2233 = sst [smem:[#allocation19_spill]] %s2222_s3 }
   0x2   :  { %2234 = sst [smem:[#allocation20_spill]] %s2224_s5 }
   0x3   :  { %11 = vsyncpa [#allocation6], 0 }
   0x4   :  { %12 = vsyncpa [#allocation5], 0 }
   0x5   :  { %14 = vsyncpa [#allocation5 + $0x1], 0 }
   0x6   :  { %15 = vsyncpa [#allocation9], 0 }
   0x7   :  { %17 = vsyncpa [#allocation9 + $0x1], 0  ;;  %s1845_s18 = smov 0   ;;  %s1847_s19 = smov 0  }
   0x8   :  { %s1849_s20 = smov 0   ;;  %s1851_s21 = smov 0  }
   0x9   :  { %s1853_s22 = smov 0   ;;  %s1855_s23 = smov 0  }
   0xa   :  { %s1857_s24 = smov 0   ;;  %s1859_s25 = smov 0  }
   0xb   :  { %s1861_s26 = smov 0   ;;  %s1863_s27 = smov 0  }
   0xc   :  { %s1865_s28 = smov 0   ;;  %s1867_s29 = smov 0  }
   0xd LB: > { %2235 = sst [smem:[#allocation13_spill]] %s1738_s18  ;;  %s2225_s30 = sadd.s32 4294967295, %s1782_s29   ;;  %s1782_s29 = sphi %s1867_s29, %s23_s29   ;;  %s1778_s28 = sphi %s1865_s28, %s2269_s28   ;;  %s1774_s27 = sphi %s1863_s27, %s2268_s27   ;;  %s1770_s26 = sphi %s1861_s26, %s2267_s26   ;;  %s1766_s25 = sphi %s1859_s25, %s2266_s25   ;;  %s1762_s24 = sphi %s1857_s24, %s2265_s24   ;;  %s1758_s23 = sphi %s1855_s23, %s2264_s23   ;;  %s1754_s22 = sphi %s1853_s22, %s2263_s22   ;;  %s1750_s21 = sphi %s1851_s21, %s2262_s21   ;;  %s1746_s20 = sphi %s1849_s20, %s2261_s20   ;;  %s1742_s19 = sphi %s1847_s19, %s2260_s19   ;;  %s1738_s18 = sphi %s1845_s18, %s2259_s18  }
   0xe   : > { %s1329_s6 = sadd.s32 4294967294, %s1782_s29   ;;  %s35_s7 = sadd.s32 1, %s1770_s26 }
   0xf   : > { %s38_s8 = sadd.s32 1, %s1774_s27  ;;  %p36_p0 = scmp.ge.s32.totalorder %s35_s7, 3 }
  0x10   : > { %s42_s9 = sadd.s32 1, %s1778_s28  ;;  %p60_p1 = scmp.ne.s32.totalorder %s1754_s22, %s1750_s21 }
  0x11   : > { %s2271_s7 = smov (%p36_p0, %s35_s7), 0  ;;  %s2273_s8 = smov (!%p36_p0, %s38_s8), %s1774_s27 }
  0x12   : > { %2236 = sst [smem:[#allocation14_spill]] %s2271_s7  ;;  %s47_s11 = ssub.s32 %s1770_s26, %s2271_s7 }
  0x13   : > { %p61_p2 = scmp.eq.s32.totalorder %s1782_s29, 0  ;;  %p40_p3 = scmp.ge.s32.totalorder %s2273_s8, 2 }
  0x14   : > { %s149_s12 = sadd.s32 1, %s1746_s20  ;;  %p159_p5 = scmp.ne.s32.totalorder %s1746_s20, %s1742_s19 }
  0x15   : > { %p1920_p4 = por %p61_p2, %p60_p1  ;;  %s2275_s8 = smov (%p40_p3, %s2273_s8), 0 }
  0x16   : > { %2238 = sst [smem:[#allocation15_spill]] %s2275_s8  ;;  %s2277_s9 = smov (!%p40_p3, %s42_s9), %s1778_s28 }
  0x17   : > { %s49_s14 = ssub.s32 %s1774_s27, %s2275_s8  ;;  %p160_p6 = scmp.eq.s32.totalorder %s2225_s30, 11 }
  0x18   : > { %p44_p7 = scmp.ge.s32.totalorder %s2277_s9, 2  ;;  %p165_p8 = scmp.ne.s32.totalorder %s1742_s19, %s1738_s18 }
  0x19   : > { %p1935_p9 = por %p160_p6, %p159_p5  ;;  %p166_p10 = scmp.eq.s32.totalorder %s1329_s6, 11 }
  0x1a   : > { %s2279_s9 = smov (%p44_p7, %s2277_s9), 0  ;;  %p1330_p12 = scmp.ge.s32.totalorder %s1782_s29, 1 }
  0x1b   : > { %s2239_s15 = scalar_select %p1935_p9, 1, 0 }
  0x1c   : > { %2240 = sst [smem:[#allocation16_spill]] %s2279_s9  ;;  %p1941_p11 = por %p166_p10, %p165_p8 }
  0x1d   : > { %s46_s17 = ssub.s32 %s1778_s28, %s2279_s9  ;;  %p201_p13 = scmp.lt.s32.totalorder %s1782_s29, 13 }
  0x1e   : > { %s2241_s16 = scalar_select %p1941_p11, 1, 0 }
  0x1f   : > { %s48_s30 = sor.u32 %s47_s11, %s46_s17  ;;  %s146_s10 = sor.u32 %s49_s14, %s46_s17 }
  0x20   : > { %2242 = sst [smem:[#allocation17_spill]] %s2241_s16  ;;  %s50_s8 = sor.u32 %s49_s14, %s48_s30 }
  0x21   : > { %p147_p0 = scmp.eq.s32.totalorder %s146_s10, 0  ;;  %p51_p1 = scmp.eq.s32.totalorder %s50_s8, 0 }
  0x22   : > { %p1949_p2 = pnand %p1330_p12, %p201_p13  ;;  %s2244_s18 = sadd.s32 1, %s1754_s22 }
  0x23   : > { %s1954_s6 = scalar_select %p147_p0, %s1746_s20, %s149_s12  }
  0x24   : > { %s1959_s5 = scalar_select %p51_p1, %s1754_s22, %s2244_s18  }
  0x25   : > { %p1462_p3 = pneg %p1949_p2  ;;  %s2246_s16 = sadd.s32 4294967295, %s1782_s29  }
  0x26   : > { %2245 = sst [smem:[#allocation18_spill]] %s1959_s5  ;;  %p1965_p5 = scmp.eq.s32.totalorder %s2246_s16, 0 }
  0x27   : > { %s2248_s3 = sld [smem:[#allocation19_spill]] }
  0x28   : > { %p1463_p6 = pnand %p1965_p5, %p1462_p3 }
  0x2a   : > { %p1607_p8 = pneg %p1463_p6 }
  0x2d   : > { %s217_s8 = sshll.u32 %s2248_s3, 4  ;;  %s218_s8 = int_to_ptr.vmem [resolvable:$true] %s217_s8 }
  0x2e   : > { %s1605_s11 = scalar_lea.vmem %s218_s8, 16  ;;  %p1613_p13 = scmp.lt.s32.totalorder %s218_s8, %s218_s8 }
  0x2f   : > { %p1606_p7 = scmp.ne.s32.totalorder %s218_s8, %s1605_s11  ;;  %p1614_p0 = scmp.lt.s32.totalorder %s1605_s11, %s1605_s11 }
  0x31   : > { %p1608_p10 = pnand %p1607_p8, %p1606_p7  ;;  %p1615_p1 = por %p1614_p0, %p1613_p13 }
  0x33   : > { %p1609_p12 = pneg %p1608_p10 }
  0x35   : > { %p1616_p11 = pnand %p1615_p1, %p1609_p12 }
  0x37   : > { %1619 = shalt.err (!%p1616_p11)
}
  0x38   : > { %s1784_s18 = smov [#allocation4]   ;;  %p1332_p9 = scmp.ge.s32.totalorder %s1782_s29, 12 }
  0x39   : > { %1465 = dma.vmem_to_smem (!%p1463_p6), %s218_s8, 16, %s1784_s18, [#allocation6]  }
  0x3a   : > { %224 = sbr.rel (%p1332_p9) target bundleno = 81 (0x51), region = 24 }
  0x41   : > { %227 = sbr.rel (!%p1920_p4) target bundleno = 81 (0x51), region = 28  ;;  %s229_s12 = sand.u32 (%p1920_p4), 1, %s1754_s22  }
  0x42   : > { %s1352_s14 = sshll.u32 (%p1920_p4), %s1770_s26, 5  ;;  %s1333_s17 = sshll.u32 (%p1920_p4), %s229_s12, 7 }
  0x43   : > { %s234_s16 = sadd.s32 (%p1920_p4), %s1774_s27, %s1352_s14  ;;  %s1453_s30 = smul.u32 (%p1920_p4), 96, %s1778_s28 }
  0x44   : > { %s231_s13 = scalar_lea.vmem (%p1920_p4), [#allocation3], %s1333_s17 }
  0x45   : > { %s236_s10 = sadd.s32 (%p1920_p4), %s1453_s30, %s234_s16 }
  0x46   : > { %s1336_s11 = sshll.u32 (%p1920_p4), %s236_s10, 3 }
  0x47   : > { %s1984_s8 = scalar_lea.vmem (%p1920_p4), %s2219_s0, %s1336_s11 }
  0x48   : > { %v296_v0 = vld [vmem:[%s1984_s8] sm:$0xff]  ;;  %v298_v1 = vld [vmem:[%s1984_s8 + $0x10] sm:$0xff] }
  0x49   : > { %v300_v2 = vld [vmem:[%s1984_s8 + $0x20] sm:$0xff]  ;;  %297 = vst [vmem:[%s231_s13] sm:$0xff] %v296_v0  ;;  %299 = vst [vmem:[%s231_s13 + $0x8] sm:$0xff] %v298_v1  ;;  %v302_v3 = vld [vmem:[%s1984_s8 + $0x30] sm:$0xff] }
  0x4a   : > { %301 = vst [vmem:[%s231_s13 + $0x10] sm:$0xff] %v300_v2  ;;  %v304_v4 = vld [vmem:[%s1984_s8 + $0x40] sm:$0xff]  ;;  %v306_v5 = vld [vmem:[%s1984_s8 + $0x50] sm:$0xff]  ;;  %303 = vst [vmem:[%s231_s13 + $0x18] sm:$0xff] %v302_v3 }
  0x4b   : > { %305 = vst [vmem:[%s231_s13 + $0x20] sm:$0xff] %v304_v4  ;;  %307 = vst [vmem:[%s231_s13 + $0x28] sm:$0xff] %v306_v5  ;;  %v308_v6 = vld [vmem:[%s1984_s8 + $0x60] sm:$0xff]  ;;  %v310_v7 = vld [vmem:[%s1984_s8 + $0x70] sm:$0xff] }
  0x4c   : > { %v312_v8 = vld [vmem:[%s1984_s8 + $0x80] sm:$0xff]  ;;  %309 = vst [vmem:[%s231_s13 + $0x30] sm:$0xff] %v308_v6  ;;  %311 = vst [vmem:[%s231_s13 + $0x38] sm:$0xff] %v310_v7  ;;  %v314_v9 = vld [vmem:[%s1984_s8 + $0x90] sm:$0xff] }
  0x4d   : > { %313 = vst [vmem:[%s231_s13 + $0x40] sm:$0xff] %v312_v8  ;;  %v316_v10 = vld [vmem:[%s1984_s8 + $0xa0] sm:$0xff]  ;;  %v318_v11 = vld [vmem:[%s1984_s8 + $0xb0] sm:$0xff]  ;;  %315 = vst [vmem:[%s231_s13 + $0x48] sm:$0xff] %v314_v9 }
  0x4e   : > { %317 = vst [vmem:[%s231_s13 + $0x50] sm:$0xff] %v316_v10  ;;  %319 = vst [vmem:[%s231_s13 + $0x58] sm:$0xff] %v318_v11  ;;  %v320_v12 = vld [vmem:[%s1984_s8 + $0xc0] sm:$0xff]  ;;  %v322_v13 = vld [vmem:[%s1984_s8 + $0xd0] sm:$0xff] }
  0x4f   : > { %v324_v14 = vld [vmem:[%s1984_s8 + $0xe0] sm:$0xff]  ;;  %321 = vst [vmem:[%s231_s13 + $0x60] sm:$0xff] %v320_v12  ;;  %323 = vst [vmem:[%s231_s13 + $0x68] sm:$0xff] %v322_v13  ;;  %v326_v15 = vld [vmem:[%s1984_s8 + $0xf0] sm:$0xff] }
  0x50   : > { %325 = vst [vmem:[%s231_s13 + $0x70] sm:$0xff] %v324_v14  ;;  %327 = vst [vmem:[%s231_s13 + $0x78] sm:$0xff] %v326_v15 }
  0x51 PF: > { %342 = sbr.rel (%p1949_p2) target bundleno = 634 (0x27a), region = 70  ;;  %s345_s3 = sand.u32 (!%p1949_p2), 1, %s1750_s21  }
  0x52   : > { %s1338_s5 = sshll.u32 (!%p1949_p2), %s345_s3, 7 }
  0x53   : > { %s2005_s18 = scalar_lea.vmem (!%p1949_p2), [#allocation3], %s1338_s5 }
  0x58   : > { %1725 = dma.done.wait (%p1965_p5), [#allocation6], 16  }
  0x59   : > { %1727 = vsyncadd (%p1965_p5), [#allocation6], 4294967280 }
  0x5a   : > { %355 = sfence }
  0x5b   : > { %s2012_s12 = sand.u32 1, %s1742_s19   ;;  %p384_p4 = scmp.lt.s32.totalorder %s1762_s24, 1 }
  0x5c   : > { %p387_p9 = scmp.eq.s32.totalorder %s1762_s24, 0  ;;  %p388_p11 = scmp.eq.s32.totalorder %s1758_s23, 0 }
  0x5d   : > { %s2016_s21 = scalar_select %p384_p4, %s1762_s24, 1 }
  0x5e   : > { %p389_p2 = pnand %p388_p11, %p387_p9  ;;  %s376_s16 = scalar_lea.vmem [#allocation7], %s2012_s12 }
  0x5f   : > { %s386_s9 = scalar_lea.vmem %s2221_s2, %s2016_s21  ;;  %s382_s17 = scalar_lea.vmem [#allocation8], %s2012_s12  ;;  %v1785_v16 = vmov (!%p389_p2), 0.0  }
  0x60   : > { %392 = sbr.rel (%p389_p2) target bundleno = 103 (0x67), region = 82  ;;  %393 = vst [vmem:[#allocation2] sm:$0xff] (!%p389_p2), %v1785_v16  ;;  %394 = vst [vmem:[#allocation2 + $0x10] sm:$0xff] (!%p389_p2), %v1785_v16 }
  0x61   : > { %395 = vst [vmem:[#allocation2 + $0x20] sm:$0xff] (!%p389_p2), %v1785_v16 }
  0x67 PF: > { %v401_v17 = vld [vmem:[%s2005_s18] sm:$0xff]  ;;  %v402_v18 = vld [vmem:[%s2005_s18 + $0x8] sm:$0xff]  ;;  %v403_v19 = vld [vmem:[%s2005_s18 + $0x10] sm:$0xff]  ;;  %v1786_v20 = vmov 0.0|0.0   ;;  %vm1787_vm0 = vmmov 0   ;;  %v1788_v23 = vmov 0.0  }
  0x68   : > { %1437 = vmatprep.subr.bf16.mxu1 %v1786_v20  ;;  %v1414_v21 = vpack.c.bf16 %v402_v18, %v401_v17  ;;  %1413 = vmatprep.subr.bf16.mxu0 %v1786_v20  ;;  %v404_v22 = vld [vmem:[%s2005_s18 + $0x18] sm:$0xff]  ;;  %v405_v25 = vld [vmem:[%s2005_s18 + $0x20] sm:$0xff]  ;;  %v406_v26 = vld [vmem:[%s2005_s18 + $0x28] sm:$0xff]  ;;  %s396_s30 = smul.u32 24, %s1758_s23  ;;  %p1340_p3 = scmp.ne.s32.totalorder %s1758_s23, 0 }
  0x69   : > { %1407 = vmatprep.mubr.msk.f32.mxu1 %vm1787_vm0, %v1788_v23  ;;  %1404 = vmatprep.mubr.msk.f32.mxu0 %vm1787_vm0, %v1788_v23  ;;  %v1417_v24 = vpack.c.bf16 %v404_v22, %v403_v19  ;;  %v1420_v27 = vpack.c.bf16 %v406_v26, %v405_v25  ;;  %v407_v28 = vld [vmem:[%s2005_s18 + $0x30] sm:$0xff]  ;;  %v408_v29 = vld [vmem:[%s2005_s18 + $0x38] sm:$0xff]  ;;  %v409_v31 = vld [vmem:[%s2005_s18 + $0x40] sm:$0xff] }
  0x6a   : > { %1445 = vmatpush3.bf16.msra.mxu1 %v1414_v21  ;;  %1415 = vmatpush3.bf16.msra.mxu0 %v1414_v21  ;;  %v1423_v30 = vpack.c.bf16 %v408_v29, %v407_v28  ;;  %v410_v32 = vld [vmem:[%s2005_s18 + $0x48] sm:$0xff]  ;;  %v411_v34 = vld [vmem:[%s2005_s18 + $0x50] sm:$0xff]  ;;  %v412_v35 = vld [vmem:[%s2005_s18 + $0x58] sm:$0xff]  ;;  %s397_s8 = scalar_lea.vmem %s2220_s1, %s396_s30 }
  0x6b   : > { %1438 = vmatprep.subr.bf16.mxu1 %v1786_v20  ;;  %1416 = vmatprep.subr.bf16.mxu0 %v1786_v20  ;;  %v1426_v33 = vpack.c.bf16 %v410_v32, %v409_v31  ;;  %v1429_v36 = vpack.c.bf16 %v412_v35, %v411_v34  ;;  %v413_v37 = vld [vmem:[%s2005_s18 + $0x60] sm:$0xff]  ;;  %v414_v38 = vld [vmem:[%s2005_s18 + $0x68] sm:$0xff]  ;;  %v415_v40 = vld [vmem:[%s2005_s18 + $0x70] sm:$0xff] }
  0x6c   : > { %v1432_v39 = vpack.c.bf16 %v414_v38, %v413_v37  ;;  %v416_v41 = vld [vmem:[%s2005_s18 + $0x78] sm:$0xff]  ;;  %v398_v44 = vld [vmem:[%s397_s8] sm:$0xff]  ;;  %v400_v45 = vld [vmem:[%s397_s8 + $0x10] sm:$0xff] }
  0x6d   : > { %v1435_v42 = vpack.c.bf16 %v416_v41, %v415_v40  ;;  %v399_v43 = vld [vmem:[%s397_s8 + $0x8] sm:$0xff] }
  0x6e   : > { %1446 = vmatpush3.bf16.msra.mxu1 %v1417_v24  ;;  %1418 = vmatpush3.bf16.msra.mxu0 %v1417_v24 }
  0x6f   : > { %1439 = vmatprep.subr.bf16.mxu1 %v1786_v20  ;;  %1419 = vmatprep.subr.bf16.mxu0 %v1786_v20 }
  0x72   : > { %1447 = vmatpush3.bf16.msra.mxu1 %v1420_v27  ;;  %1421 = vmatpush3.bf16.msra.mxu0 %v1420_v27 }
  0x73   : > { %1440 = vmatprep.subr.bf16.mxu1 %v1786_v20  ;;  %1422 = vmatprep.subr.bf16.mxu0 %v1786_v20 }
  0x76   : > { %1448 = vmatpush3.bf16.msra.mxu1 %v1423_v30  ;;  %1424 = vmatpush3.bf16.msra.mxu0 %v1423_v30 }
  0x77   : > { %1441 = vmatprep.subr.bf16.mxu1 %v1786_v20  ;;  %1425 = vmatprep.subr.bf16.mxu0 %v1786_v20 }
  0x7a   : > { %1449 = vmatpush3.bf16.msra.mxu1 %v1426_v33  ;;  %1427 = vmatpush3.bf16.msra.mxu0 %v1426_v33 }
  0x7b   : > { %1442 = vmatprep.subr.bf16.mxu1 %v1786_v20  ;;  %1428 = vmatprep.subr.bf16.mxu0 %v1786_v20 }
  0x7e   : > { %1450 = vmatpush3.bf16.msra.mxu1 %v1429_v36  ;;  %1430 = vmatpush3.bf16.msra.mxu0 %v1429_v36 }
  0x7f   : > { %1443 = vmatprep.subr.bf16.mxu1 %v1786_v20  ;;  %1431 = vmatprep.subr.bf16.mxu0 %v1786_v20 }
  0x82   : > { %1451 = vmatpush3.bf16.msra.mxu1 %v1432_v39  ;;  %1433 = vmatpush3.bf16.msra.mxu0 %v1432_v39 }
  0x83   : > { %1444 = vmatprep.subr.bf16.mxu1 %v1786_v20  ;;  %1434 = vmatprep.subr.bf16.mxu0 %v1786_v20 }
  0x86   : > { %1452 = vmatpush3.bf16.msra.mxu1 %v1435_v42  ;;  %1436 = vmatpush3.bf16.msra.mxu0 %v1435_v42 }
  0x89   : > { %1408 = vmatmul.mubr.f32.vlgmr.msra.gmra.mrb[0].mxu1 %v399_v43  ;;  %1405 = vmatmul.mubr.f32.vlgmr.msra.gmra.mrb[0].mxu0 %v398_v44 }
  0x8a   : > { %1410 = vmatprep.mubr.msk.f32.mxu1 %vm1787_vm0, %v1788_v23 }
  0x8d   : > { %1411 = vmatmul.mubr.f32.gmra.mrb[2].mxu1 %v400_v45 }
 0x15b   : > { %499 = sbr.rel (%p1340_p3) target bundleno = 354 (0x162), region = 86 }
 0x15c   : > { %v488_v46 = vpop.f32.mrb[0].mxu1  ;;  %v483_v47 = vpop.f32.mrb[0].mxu0 }
 0x15d   : > { %v1409_v48 = vpop.f32.mrb[1].mxu1  ;;  %v1406_v49 = vpop.f32.mrb[1].mxu0  ;;  %500 = vst [vmem:[#allocation2 + $0x8] sm:$0xff] (!%p1340_p3), %v483_v47  ;;  %501 = vst [vmem:[#allocation2 + $0x18] sm:$0xff] (!%p1340_p3), %v488_v46 }
 0x160   : > { %v493_v50 = vpop.f32.mrb[2].mxu1 }
 0x161   : > { %v1412_v51 = vpop.f32.mrb[3].mxu1  ;;  %502 = vst [vmem:[#allocation2 + $0x28] sm:$0xff] (!%p1340_p3), %v493_v50 }
 0x162 PF: > { %p1341_p5 = scmp.le.s32.totalorder %s1758_s23, 0 }
 0x164   : > { %506 = sbr.rel (%p1341_p5) target bundleno = 364 (0x16c), region = 90  ;;  %v507_v52 = vld [vmem:[#allocation2 + $0x8] sm:$0xff] (!%p1341_p5)  ;;  %v508_v53 = vld [vmem:[#allocation2 + $0x18] sm:$0xff] (!%p1341_p5) }
 0x165   : > { %v510_v55 = vadd.f32 (!%p1341_p5), %v507_v52, %v483_v47  ;;  %v511_v56 = vadd.f32 (!%p1341_p5), %v508_v53, %v488_v46 }
 0x167   : > { %513 = vst [vmem:[#allocation2 + $0x8] sm:$0xff] (!%p1341_p5), %v510_v55  ;;  %514 = vst [vmem:[#allocation2 + $0x18] sm:$0xff] (!%p1341_p5), %v511_v56 }
 0x168   : > { %v509_v54 = vld [vmem:[#allocation2 + $0x28] sm:$0xff] (!%p1341_p5) }
 0x169   : > { %v512_v57 = vadd.f32 (!%p1341_p5), %v509_v54, %v493_v50 }
 0x16b   : > { %515 = vst [vmem:[#allocation2 + $0x28] sm:$0xff] %v512_v57 }
 0x16c PF: > { %p1342_p6 = scmp.ne.s32.totalorder %s1758_s23, 2 }
 0x16d   : > { %v521_v58 = vld [vmem:[#allocation2] ss:$0 sm:$0xff] (!%p1342_p6)  ;;  %v529_v60 = vlaneseq (!%p1342_p6)  ;;  %v1789_v61 = vmov (!%p1342_p6), 1966171168   ;;  %v573_v63 = vld [vmem:[#allocation2 + $0x2] ss:$0 sm:$0xff] (!%p1342_p6) }
 0x16e   : > { %519 = sbr.rel (%p1342_p6) target bundleno = 584 (0x248), region = 94  ;;  %v527_v62 = vunpack.c.l.s4 (!%p1342_p6), %v1789_v61  ;;  %v547_v2 = vld [vmem:[#allocation2 + $0x1] ss:$0 sm:$0xff] (!%p1342_p6)  ;;  %v599_v8 = vld [vmem:[#allocation2 + $0x3] ss:$0 sm:$0xff] (!%p1342_p6)  ;;  %s1790_s23 = smov (!%p1342_p6), 23  }
 0x16f   : > { %v522_v59 = vld [vmem:[#allocation2 + $0x8] ss:$0 sm:$0xff] (!%p1342_p6)  ;;  %v574_v0 = vld [vmem:[#allocation2 + $0xa] ss:$0 sm:$0xff] (!%p1342_p6)  ;;  %v530_v1 = vshrl.u32 (!%p1342_p6), %v529_v60, 7  ;;  %s1791_s13 = smov (!%p1342_p6), 21  }
 0x170   : > { %v548_v3 = vld [vmem:[#allocation2 + $0x9] ss:$0 sm:$0xff] (!%p1342_p6)  ;;  %v525_v4 = vcombine.low (!%p1342_p6), %v521_v58, %v522_v59  ;;  %v528_v5 = vunpack.c.0.s8 (!%p1342_p6), %v527_v62  ;;  %v577_v6 = vcombine.low (!%p1342_p6), %v573_v63, %v574_v0  ;;  %v600_v9 = vld [vmem:[#allocation2 + $0xb] ss:$0 sm:$0xff] (!%p1342_p6)  ;;  %v625_v11 = vld [vmem:[#allocation2 + $0x4] ss:$0 sm:$0xff] (!%p1342_p6) }
 0x171   : > { %v551_v7 = vcombine.low (!%p1342_p6), %v547_v2, %v548_v3  ;;  %v603_v10 = vcombine.low (!%p1342_p6), %v599_v8, %v600_v9  ;;  %v626_v12 = vld [vmem:[#allocation2 + $0xc] ss:$0 sm:$0xff] (!%p1342_p6)  ;;  %v651_v13 = vld [vmem:[#allocation2 + $0x5] ss:$0 sm:$0xff] (!%p1342_p6)  ;;  %v652_v15 = vld [vmem:[#allocation2 + $0xd] ss:$0 sm:$0xff] (!%p1342_p6) }
 0x172   : > { %v2052_v14 = vsub.s32 (!%p1342_p6), %v528_v5, %v530_v1  ;;  %v629_v16 = vcombine.low (!%p1342_p6), %v625_v11, %v626_v12  ;;  %v655_v17 = vcombine.low (!%p1342_p6), %v651_v13, %v652_v15  ;;  %v677_v18 = vld [vmem:[#allocation2 + $0x6] ss:$0 sm:$0xff] (!%p1342_p6)  ;;  %v678_v23 = vld [vmem:[#allocation2 + $0xe] ss:$0 sm:$0xff] (!%p1342_p6)  ;;  %v703_v24 = vld [vmem:[#allocation2 + $0x7] ss:$0 sm:$0xff] (!%p1342_p6) }
 0x173   : > { %v704_v25 = vld [vmem:[#allocation2 + $0xf] ss:$0 sm:$0xff] (!%p1342_p6)  ;;  %v681_v30 = vcombine.low (!%p1342_p6), %v677_v18, %v678_v23  ;;  %vm1153_vm1 = vcmask (!%p1342_p6), 1048392   ;;  %v729_v35 = vld [vmem:[#allocation2 + $0x10] ss:$0 sm:$0xff] (!%p1342_p6)  ;;  %v1151_v48 = vld [vmem:[#allocation2 + $0x18] sm:$0xff] (!%p1342_p6) }
 0x174   : > { %v532_v19 = vrot.slane (!%p1342_p6), %v525_v4, %v2052_v14  ;;  %v584_v20 = vrot.slane (!%p1342_p6), %v577_v6, %v2052_v14  ;;  %v558_v21 = vrot.slane (!%p1342_p6), %v551_v7, %v2052_v14  ;;  %v610_v22 = vrot.slane (!%p1342_p6), %v603_v10, %v2052_v14  ;;  %v1150_v28 = vld [vmem:[#allocation2 + $0x8] sm:$0xff] (!%p1342_p6)  ;;  %v730_v36 = vld [vmem:[#allocation2 + $0x18] ss:$0 sm:$0xff] (!%p1342_p6)  ;;  %v755_v37 = vld [vmem:[#allocation2 + $0x11] ss:$0 sm:$0xff] (!%p1342_p6)  ;;  %s1792_s3 = smov (!%p1342_p6), 22  }
 0x175   : > { %v636_v29 = vrot.slane %v629_v16, %v2052_v14  ;;  %v707_v31 = vcombine.low %v703_v24, %v704_v25  ;;  %v662_v34 = vrot.slane %v655_v17, %v2052_v14  ;;  %1154 = vst.msk [vmem:[#allocation2] sm:$0xff] %vm1153_vm1, %v1150_v28  ;;  %v756_v38 = vld [vmem:[#allocation2 + $0x19] ss:$0 sm:$0xff]  ;;  %v781_v39 = vld [vmem:[#allocation2 + $0x12] ss:$0 sm:$0xff]  ;;  %v688_v44 = vrot.slane %v681_v30, %v2052_v14  ;;  %s1793_s5 = smov 20  }
 0x176   : > { %v539_v26 = vrot.slane %v532_v19, %v2052_v14  ;;  %v591_v27 = vrot.slane %v584_v20, %v2052_v14  ;;  %v565_v32 = vrot.slane %v558_v21, %v2052_v14  ;;  %v617_v33 = vrot.slane %v610_v22, %v2052_v14  ;;  %v807_v40 = vld [vmem:[#allocation2 + $0x13] ss:$0 sm:$0xff]  ;;  %v833_v41 = vld [vmem:[#allocation2 + $0x14] ss:$0 sm:$0xff]  ;;  %v859_v42 = vld [vmem:[#allocation2 + $0x15] ss:$0 sm:$0xff] }
 0x177   : > { %v643_v43 = vrot.slane %v636_v29, %v2052_v14  ;;  %v714_v45 = vrot.slane %v707_v31, %v2052_v14  ;;  %v885_v46 = vld [vmem:[#allocation2 + $0x16] ss:$0 sm:$0xff]  ;;  %v911_v47 = vld [vmem:[#allocation2 + $0x17] ss:$0 sm:$0xff]  ;;  %v669_v49 = vrot.slane %v662_v34, %v2052_v14  ;;  %v733_v50 = vcombine.low %v729_v35, %v730_v36  ;;  %v782_v52 = vld [vmem:[#allocation2 + $0x1a] ss:$0 sm:$0xff] }
 0x178   : > { %540 = vrot.lane.b32.xlu0 %v539_v26, %s1790_s23  ;;  %592 = vrot.lane.b32.xlu1 %v591_v27, %s1791_s13  ;;  %v759_v51 = vcombine.low %v755_v37, %v756_v38  ;;  %1155 = vst.msk [vmem:[#allocation2 + $0x10] sm:$0xff] %vm1153_vm1, %v1151_v48  ;;  %v808_v53 = vld [vmem:[#allocation2 + $0x1b] ss:$0 sm:$0xff]  ;;  %v834_v54 = vld [vmem:[#allocation2 + $0x1c] ss:$0 sm:$0xff]  ;;  %v695_v55 = vrot.slane %v688_v44, %v2052_v14  ;;  %s1794_s18 = smov 19  }
 0x179   : > { %v721_v56 = vrot.slane %v714_v45, %v2052_v14  ;;  %v785_v57 = vcombine.low %v781_v39, %v782_v52  ;;  %v860_v58 = vld [vmem:[#allocation2 + $0x1d] ss:$0 sm:$0xff]  ;;  %v937_v59 = vld [vmem:[#allocation2 + $0x20] ss:$0 sm:$0xff]  ;;  %v963_v60 = vld [vmem:[#allocation2 + $0x21] ss:$0 sm:$0xff]  ;;  %v740_v61 = vrot.slane %v733_v50, %v2052_v14  ;;  %v811_v63 = vcombine.low %v807_v40, %v808_v53 }
 0x17a   : > { %s1795_s7 = smov 18   ;;  %v766_v62 = vrot.slane %v759_v51, %v2052_v14  ;;  %v989_v0 = vld [vmem:[#allocation2 + $0x22] ss:$0 sm:$0xff]  ;;  %v1015_v1 = vld [vmem:[#allocation2 + $0x23] ss:$0 sm:$0xff]  ;;  %v1152_v5 = vld [vmem:[#allocation2 + $0x28] sm:$0xff]  ;;  %v837_v7 = vcombine.low %v833_v41, %v834_v54  ;;  %v863_v8 = vcombine.low %v859_v42, %v860_v58 }
 0x17b   : > { %v2074_v2 = vld [vmem:[#allocation2 + $0x24] ss:$0 sm:$0xff]  ;;  %v2076_v3 = vld [vmem:[#allocation2 + $0x25] ss:$0 sm:$0xff]  ;;  %v2078_v4 = vld [vmem:[#allocation2 + $0x26] ss:$0 sm:$0xff]  ;;  %v792_v6 = vrot.slane %v785_v57, %v2052_v14  ;;  %v747_v9 = vrot.slane %v740_v61, %v2052_v14  ;;  %v818_v11 = vrot.slane %v811_v63, %v2052_v14 }
 0x17c   : > { %566 = vrot.lane.b32.xlu0 %v565_v32, %s1792_s3  ;;  %618 = vrot.lane.b32.xlu1 %v617_v33, %s1793_s5  ;;  %1156 = vst.msk [vmem:[#allocation2 + $0x20] sm:$0xff] %vm1153_vm1, %v1152_v5  ;;  %s1796_s14 = smov 17   ;;  %s1797_s30 = smov 16   ;;  %v773_v10 = vrot.slane %v766_v62, %v2052_v14  ;;  %v886_v12 = vld [vmem:[#allocation2 + $0x1e] ss:$0 sm:$0xff]  ;;  %v844_v15 = vrot.slane %v837_v7, %v2052_v14  ;;  %vm543_vm2 = vcmask 187392  }
 0x17d   : > { %v912_v13 = vld [vmem:[#allocation2 + $0x1f] ss:$0 sm:$0xff]  ;;  %v889_v16 = vcombine.low %v885_v46, %v886_v12  ;;  %s1798_s10 = smov 15   ;;  %s1799_s11 = smov 14   ;;  %v799_v18 = vrot.slane %v792_v6, %v2052_v14  ;;  %v825_v19 = vrot.slane %v818_v11, %v2052_v14  ;;  %v870_v20 = vrot.slane %v863_v8, %v2052_v14  ;;  %v938_v21 = vld [vmem:[#allocation2 + $0x28] ss:$0 sm:$0xff] }
 0x17e   : > { %v915_v17 = vcombine.low %v911_v47, %v912_v13  ;;  %v964_v22 = vld [vmem:[#allocation2 + $0x29] ss:$0 sm:$0xff]  ;;  %v851_v23 = vrot.slane %v844_v15, %v2052_v14  ;;  %s1800_s8 = smov 13   ;;  %s1801_s23 = smov 12   ;;  %v941_v27 = vcombine.low %v937_v59, %v938_v21  ;;  %v990_v29 = vld [vmem:[#allocation2 + $0x2a] ss:$0 sm:$0xff] }
 0x17f   : > { %v896_v24 = vrot.slane %v889_v16, %v2052_v14  ;;  %v877_v26 = vrot.slane %v870_v20, %v2052_v14  ;;  %v967_v28 = vcombine.low %v963_v60, %v964_v22  ;;  %v1016_v30 = vld [vmem:[#allocation2 + $0x2b] ss:$0 sm:$0xff]  ;;  %v993_v32 = vcombine.low %v989_v0, %v990_v29  ;;  %s1802_s13 = smov 11   ;;  %s1803_s3 = smov 10   ;;  %v1042_v37 = vld [vmem:[#allocation2 + $0x2c] ss:$0 sm:$0xff] }
 0x180   : > { %644 = vrot.lane.b32.xlu0 %v643_v43, %s1794_s18  ;;  %670 = vrot.lane.b32.xlu1 %v669_v49, %s1795_s7  ;;  %v922_v25 = vrot.slane %v915_v17, %v2052_v14  ;;  %v1019_v33 = vcombine.low %v1015_v1, %v1016_v30  ;;  %v948_v35 = vrot.slane %v941_v27, %v2052_v14  ;;  %v1068_v38 = vld [vmem:[#allocation2 + $0x2d] ss:$0 sm:$0xff]  ;;  %s1804_s5 = smov 9   ;;  %s1805_s18 = smov 8   ;;  %v1094_v45 = vld [vmem:[#allocation2 + $0x2e] ss:$0 sm:$0xff] }
 0x181   : > { %v903_v31 = vrot.slane %v896_v24, %v2052_v14  ;;  %v974_v36 = vrot.slane %v967_v28, %v2052_v14  ;;  %v1000_v39 = vrot.slane %v993_v32, %v2052_v14  ;;  %v1045_v41 = vcombine.low %v2074_v2, %v1042_v37  ;;  %s1806_s7 = smov 7   ;;  %v520_v58 = vld [vmem:[%s386_s9] sm:$0x1]  ;;  %s1121_s21 = sld [smem:[#allocation4]] }
 0x182   : > { %v929_v34 = vrot.slane %v922_v25, %v2052_v14  ;;  %v1026_v40 = vrot.slane %v1019_v33, %v2052_v14  ;;  %v955_v42 = vrot.slane %v948_v35, %v2052_v14  ;;  %v1071_v44 = vcombine.low %v2076_v3, %v1068_v38  ;;  %s1344_s9 = sld [smem:[#allocation4 + $0x2]] }
 0x183   : > { %v981_v43 = vrot.slane %v974_v36, %v2052_v14  ;;  %v1007_v46 = vrot.slane %v1000_v39, %v2052_v14  ;;  %v1097_v47 = vcombine.low %v2078_v4, %v1094_v45  ;;  %v1052_v49 = vrot.slane %v1045_v41, %v2052_v14 }
 0x184   : > { %696 = vrot.lane.b32.xlu0 %v695_v55, %s1796_s14  ;;  %722 = vrot.lane.b32.xlu1 %v721_v56, %s1797_s30  ;;  %s1807_s14 = smov 6   ;;  %v1033_v48 = vrot.slane %v1026_v40, %v2052_v14  ;;  %v1078_v50 = vrot.slane %v1071_v44, %v2052_v14  ;;  %s1808_s30 = smov 5   ;;  %vm569_vm3 = vcmask 179200   ;;  %vm595_vm4 = vcmask 171008  }
 0x185   : > { %v1059_v51 = vrot.slane %v1052_v49, %v2052_v14  ;;  %v1104_v53 = vrot.slane %v1097_v47, %v2052_v14  ;;  %vm621_vm5 = vcmask 162816   ;;  %vm647_vm6 = vcmask 154624  }
 0x186   : > { %v1085_v52 = vrot.slane %v1078_v50, %v2052_v14  ;;  %vm673_vm7 = vcmask 146432   ;;  %vm699_vm8 = vcmask 138240   ;;  %vm725_vm9 = vcmask 130048  }
 0x187   : > { %v1111_v54 = vrot.slane %v1104_v53, %v2052_v14  ;;  %vm751_vm10 = vcmask 121856   ;;  %vm777_vm11 = vcmask 113664   ;;  %vm803_vm12 = vcmask 105472  }
 0x188   : > { %748 = vrot.lane.b32.xlu0 %v747_v9, %s1798_s10  ;;  %774 = vrot.lane.b32.xlu1 %v773_v10, %s1799_s11  ;;  %s1809_s10 = smov 4   ;;  %s1810_s11 = smov 3   ;;  %vm829_vm13 = vcmask 97280   ;;  %vm855_vm14 = vcmask 89088   ;;  %vm881_vm15 = vcmask 80896   ;;  %vm907_vm0 = vcmask 72704  }
 0x189   : > { %vm933_vm1 = vcmask 64512  }
 0x18c   : > { %800 = vrot.lane.b32.xlu0 %v799_v18, %s1800_s8  ;;  %826 = vrot.lane.b32.xlu1 %v825_v19, %s1801_s23  ;;  %s1811_s8 = smov 2   ;;  %s1812_s23 = smov 1  }
 0x190   : > { %852 = vrot.lane.b32.xlu0 %v851_v23, %s1802_s13  ;;  %878 = vrot.lane.b32.xlu1 %v877_v26, %s1803_s3 }
 0x194   : > { %904 = vrot.lane.b32.xlu0 %v903_v31, %s1804_s5  ;;  %930 = vrot.lane.b32.xlu1 %v929_v34, %s1805_s18  ;;  %s1343_s5 = sld [smem:[#allocation4 + $0x1]]  ;;  %s1345_s18 = sld [smem:[#allocation4 + $0x3]] }
 0x198   : > { %956 = vrot.lane.b32.xlu0 %v955_v42, %s1806_s7  ;;  %982 = vrot.lane.b32.xlu1 %v981_v43, %s1807_s14 }
 0x19c   : > { %1008 = vrot.lane.b32.xlu0 %v1007_v46, %s1808_s30  ;;  %1034 = vrot.lane.b32.xlu1 %v1033_v48, %s1809_s10 }
 0x1a0   : > { %1060 = vrot.lane.b32.xlu0 %v1059_v51, %s1810_s11  ;;  %1086 = vrot.lane.b32.xlu1 %v1085_v52, %s1811_s8 }
 0x1a4   : > { %1112 = vrot.lane.b32.xlu0 %v1111_v54, %s1812_s23 }
 0x1ea   : > { %v541_v55 = vpop.permute.xlu0 %540  ;;  %v593_v56 = vpop.permute.xlu1 %592 }
 0x1eb   : > { %v542_v57 = vrot.slane %v541_v55, 1  ;;  %v594_v62 = vrot.slane %v593_v56, 1 }
 0x1ed   : > { %v544_v59 = vsel %vm543_vm2, %v541_v55, %v542_v57  ;;  %v596_v5 = vsel %vm595_vm4, %v593_v56, %v594_v62  ;;  %vm959_vm2 = vcmask 56320   ;;  %vm1011_vm4 = vcmask 39936  }
 0x1ee   : > { %v567_v60 = vpop.permute.xlu0 %566  ;;  %v619_v61 = vpop.permute.xlu1 %618  ;;  %v546_v0 = vadd.f32 %v544_v59, %v520_v58 }
 0x1ef   : > { %v568_v63 = vrot.slane %v567_v60, 1  ;;  %v620_v1 = vrot.slane %v619_v61, 1 }
 0x1f1   : > { %v570_v14 = vsel %vm569_vm3, %v567_v60, %v568_v63  ;;  %v622_v8 = vsel %vm621_vm5, %v619_v61, %v620_v1  ;;  %vm985_vm3 = vcmask 48128   ;;  %vm1037_vm5 = vcmask 31744  }
 0x1f2   : > { %v572_v2 = vadd.f32 %v570_v14, %v546_v0  ;;  %v645_v3 = vpop.permute.xlu0 %644  ;;  %v671_v4 = vpop.permute.xlu1 %670 }
 0x1f3   : > { %v646_v6 = vrot.slane %v645_v3, 1  ;;  %v672_v9 = vrot.slane %v671_v4, 1 }
 0x1f4   : > { %v598_v7 = vadd.f32 %v596_v5, %v572_v2 }
 0x1f5   : > { %v648_v13 = vsel %vm647_vm6, %v645_v3, %v646_v6  ;;  %v674_v17 = vsel %vm673_vm7, %v671_v4, %v672_v9  ;;  %vm1063_vm6 = vcmask 23552   ;;  %vm1089_vm7 = vcmask 15360  }
 0x1f6   : > { %v624_v10 = vadd.f32 %v622_v8, %v598_v7  ;;  %v697_v11 = vpop.permute.xlu0 %696  ;;  %v723_v12 = vpop.permute.xlu1 %722 }
 0x1f7   : > { %v698_v15 = vrot.slane %v697_v11, 1  ;;  %v724_v18 = vrot.slane %v723_v12, 1 }
 0x1f8   : > { %v650_v16 = vadd.f32 %v648_v13, %v624_v10 }
 0x1f9   : > { %v700_v22 = vsel %vm699_vm8, %v697_v11, %v698_v15  ;;  %v726_v25 = vsel %vm725_vm9, %v723_v12, %v724_v18  ;;  %vm1115_vm8 = vcmask 7168   ;;  %v1119_v18 = vld [vmem:[#allocation2 + $0x2f] ss:$0 sm:$0xff] }
 0x1fa   : > { %v676_v19 = vadd.f32 %v674_v17, %v650_v16  ;;  %v749_v20 = vpop.permute.xlu0 %748  ;;  %v775_v21 = vpop.permute.xlu1 %774 }
 0x1fb   : > { %v750_v23 = vrot.slane %v749_v20, 1  ;;  %v776_v26 = vrot.slane %v775_v21, 1 }
 0x1fc   : > { %v702_v24 = vadd.f32 %v700_v22, %v676_v19  ;;  %v1130_v22 = vstv %s1121_s21 }
 0x1fd   : > { %v752_v30 = vsel %vm751_vm10, %v749_v20, %v750_v23  ;;  %v778_v33 = vsel %vm777_vm11, %v775_v21, %v776_v26  ;;  %v1125_v21 = vstv %s1344_s9 }
 0x1fe   : > { %v728_v27 = vadd.f32 %v726_v25, %v702_v24  ;;  %v801_v28 = vpop.permute.xlu0 %800  ;;  %v827_v29 = vpop.permute.xlu1 %826  ;;  %v1127_v24 = vstv %s1345_s18  ;;  %v1132_v25 = vstv %s1343_s5 }
 0x1ff   : > { %v802_v31 = vrot.slane %v801_v28, 1  ;;  %v828_v34 = vrot.slane %v827_v29, 1 }
 0x200   : > { %v754_v32 = vadd.f32 %v752_v30, %v728_v27 }
 0x201   : > { %v804_v38 = vsel %vm803_vm12, %v801_v28, %v802_v31  ;;  %v830_v41 = vsel %vm829_vm13, %v827_v29, %v828_v34 }
 0x202   : > { %v780_v35 = vadd.f32 %v778_v33, %v754_v32  ;;  %v853_v36 = vpop.permute.xlu0 %852  ;;  %v879_v37 = vpop.permute.xlu1 %878 }
 0x203   : > { %v854_v39 = vrot.slane %v853_v36, 1  ;;  %v880_v42 = vrot.slane %v879_v37, 1 }
 0x204   : > { %v806_v40 = vadd.f32 %v804_v38, %v780_v35 }
 0x205   : > { %v856_v46 = vsel %vm855_vm14, %v853_v36, %v854_v39  ;;  %v882_v49 = vsel %vm881_vm15, %v879_v37, %v880_v42 }
 0x206   : > { %v832_v43 = vadd.f32 %v830_v41, %v806_v40  ;;  %v905_v44 = vpop.permute.xlu0 %904  ;;  %v931_v45 = vpop.permute.xlu1 %930 }
 0x207   : > { %v906_v47 = vrot.slane %v905_v44, 1  ;;  %v932_v50 = vrot.slane %v931_v45, 1 }
 0x208   : > { %v858_v48 = vadd.f32 %v856_v46, %v832_v43 }
 0x209   : > { %v908_v54 = vsel %vm907_vm0, %v905_v44, %v906_v47  ;;  %v934_v57 = vsel %vm933_vm1, %v931_v45, %v932_v50 }
 0x20a   : > { %v884_v51 = vadd.f32 %v882_v49, %v858_v48  ;;  %v957_v52 = vpop.permute.xlu0 %956  ;;  %v983_v53 = vpop.permute.xlu1 %982 }
 0x20b   : > { %v958_v55 = vrot.slane %v957_v52, 1  ;;  %v984_v58 = vrot.slane %v983_v53, 1 }
 0x20c   : > { %v910_v56 = vadd.f32 %v908_v54, %v884_v51 }
 0x20d   : > { %v960_v62 = vsel %vm959_vm2, %v957_v52, %v958_v55  ;;  %v986_v14 = vsel %vm985_vm3, %v983_v53, %v984_v58 }
 0x20e   : > { %v936_v59 = vadd.f32 %v934_v57, %v910_v56  ;;  %v1009_v60 = vpop.permute.xlu0 %1008  ;;  %v1035_v61 = vpop.permute.xlu1 %1034 }
 0x20f   : > { %v1010_v63 = vrot.slane %v1009_v60, 1  ;;  %v1036_v1 = vrot.slane %v1035_v61, 1 }
 0x210   : > { %v962_v0 = vadd.f32 %v960_v62, %v936_v59 }
 0x211   : > { %v1012_v5 = vsel %vm1011_vm4, %v1009_v60, %v1010_v63  ;;  %v1038_v8 = vsel %vm1037_vm5, %v1035_v61, %v1036_v1 }
 0x212   : > { %v988_v2 = vadd.f32 %v986_v14, %v962_v0  ;;  %v1061_v3 = vpop.permute.xlu0 %1060  ;;  %v1087_v4 = vpop.permute.xlu1 %1086 }
 0x213   : > { %v1062_v6 = vrot.slane %v1061_v3, 1  ;;  %v1088_v9 = vrot.slane %v1087_v4, 1 }
 0x214   : > { %v1014_v7 = vadd.f32 %v1012_v5, %v988_v2 }
 0x215   : > { %v1064_v12 = vsel %vm1063_vm6, %v1061_v3, %v1062_v6  ;;  %v1090_v16 = vsel %vm1089_vm7, %v1087_v4, %v1088_v9 }
 0x216   : > { %v1040_v10 = vadd.f32 %v1038_v8, %v1014_v7  ;;  %v1113_v11 = vpop.permute.xlu0 %1112 }
 0x217   : > { %v1114_v13 = vrot.slane %v1113_v11, 1 }
 0x218   : > { %v1066_v15 = vadd.f32 %v1064_v12, %v1040_v10 }
 0x219   : > { %v1116_v19 = vsel %vm1115_vm8, %v1113_v11, %v1114_v13 }
 0x21a   : > { %v1092_v17 = vadd.f32 %v1090_v16, %v1066_v15 }
 0x21c   : > { %v1118_v20 = vadd.f32 %v1116_v19, %v1092_v17 }
 0x21e   : > { %v1120_v23 = vadd.f32 %v1119_v18, %v1118_v20 }
 0x220   : > { %v1126_v26 = vmul.f32 %v1125_v21, %v1120_v23  ;;  %v1131_v27 = vmul.f32 %v1130_v22, %v1120_v23 }
 0x222   : > { %v1128_v28 = vadd.f32 %v1127_v24, %v1126_v26  ;;  %v1133_v29 = vadd.f32 %v1132_v25, %v1131_v27 }
 0x224   : > { %1129 = vst [vmem:[%s376_s16] sm:$0x1] %v1128_v28  ;;  %v1135_v30 = vand.u32 2147483647, %v1133_v29  ;;  %v1134_v41 = vmin.f32 %v1133_v29, 0.0 }
 0x226   : > { %v1136_v31 = vsub.f32 0.0, %v1135_v30 }
 0x228   : > { %v1137_v32 = vmul.f32 1.442695, %v1136_v31 }
 0x22a   : > { %1601 = vpow2.f32 %v1137_v32 }
 0x234   : > { %v1602_v33 = vpop.eup %1601 }
 0x235   : > { %v1139_v34 = vadd.f32 1.0, %v1602_v33  ;;  %v1142_v35 = vmul.f32 -0.5, %v1602_v33  ;;  %v1145_v37 = vand.u32 2147483647, %v1602_v33 }
 0x237   : > { %1603 = vlog2.f32 %v1139_v34  ;;  %v1143_v36 = vadd.f32 1.0, %v1142_v35  ;;  %vm1146_vm9 = vcmp.lt.f32.partialorder %v1145_v37, 0.0004427343 }
 0x239   : > { %v1144_v40 = vmul.f32 %v1602_v33, %v1143_v36 }
 0x241   : > { %v1604_v38 = vpop.eup %1603 }
 0x242   : > { %v1141_v39 = vmul.f32 0.6931472, %v1604_v38 }
 0x244   : > { %v1147_v42 = vsel %vm1146_vm9, %v1144_v40, %v1141_v39 }
 0x245   : > { %v1148_v43 = vsub.f32 %v1134_v41, %v1147_v42 }
 0x247   : > { %1149 = vst [vmem:[%s382_s17] sm:$0x1] %v1148_v43 }
 0x248 PF: > { %s1346_s7 = sshll.u32 %s1766_s25, 1  ;;  %s1176_s30 = sshll.u32 %s376_s16, 4  ;;  %s2128_s30 = int_to_ptr.vmem [resolvable:$true] %s1176_s30 }
 0x249   : > { %s2123_s14 = sadd.s32 %s1762_s24, %s1346_s7  ;;  %s1158_s13 = scalar_lea.sflag [#allocation5], %s2012_s12 }
 0x24a   : > { %s1347_s10 = sshll.u32 %s2123_s14, 4  ;;  %s1620_s3 = scalar_lea.vmem %s2128_s30, 16 }
 0x24b   : > { %s1174_s23 = scalar_lea.hbm %s2223_s4, %s1347_s10  ;;  %p1621_p7 = scmp.ne.s32.totalorder %s2128_s30, %s1620_s3 }
 0x24c   : > { %p2249_p8 = scmp.ne.s32.totalorder %s2239_s15, 0  ;;  %s1813_s24 = smov [#allocation7]  }
 0x24d   : > { %s1624_s25 = sshll.u32 %s1813_s24, 4  ;;  %s1625_s25 = int_to_ptr.vmem [resolvable:$false] %s1624_s25 }
 0x24e   : > { %p1622_p10 = pnand %p1621_p7, %p2249_p8  ;;  %s1626_s16 = scalar_lea.vmem %s1625_s25, 32 }
 0x24f   : > { %p1627_p13 = scmp.lt.s32.totalorder %s2128_s30, %s1625_s25  ;;  %p1628_p0 = scmp.lt.s32.totalorder %s1626_s16, %s1620_s3 }
 0x250   : > { %p1623_p12 = pneg %p1622_p10 }
 0x251   : > { %p1629_p1 = por %p1628_p0, %p1627_p13 }
 0x253   : > { %p1630_p4 = pnand %p1629_p1, %p1623_p12 }
 0x255   : > { %1633 = shalt.err (!%p1630_p4)
}
 0x256   : > { %s1634_s21 = scalar_lea.hbm %s1174_s23, 16  ;;  %s1638_s18 = scalar_lea.hbm %s2223_s4, 64 }
 0x257   : > { %p1635_p9 = scmp.ne.s32.totalorder %s1174_s23, %s1634_s21  ;;  %p1639_p3 = scmp.lt.u32.totalorder %s1174_s23, %s2223_s4 }
 0x258   : > { %p1640_p5 = scmp.lt.u32.totalorder %s1638_s18, %s1634_s21  ;;  %p1642_p7 = scmp.lt.u32.totalorder %s1634_s21, %s1174_s23 }
 0x259   : > { %p1636_p11 = pnand %p1635_p9, %p2249_p8 }
 0x25a   : > { %p1641_p6 = por %p1640_p5, %p1639_p3 }
 0x25b   : > { %p1637_p2 = pneg %p1636_p11 }
 0x25c   : > { %p1643_p10 = por %p1642_p7, %p1641_p6 }
 0x25e   : > { %p1644_p12 = pnand %p1643_p10, %p1637_p2 }
 0x260   : > { %1647 = shalt.err (!%p1644_p12)
}
 0x261   : > { %1458 = dma.vmem_to_hbm [thread:$0]  (%p2249_p8), %s2128_s30, 16, %s1174_s23, %s1158_s13  }
 0x262   : > { %s2250_s24 = sld [smem:[#allocation20_spill]]  ;;  %s1191_s9 = sshll.u32 %s382_s17, 4  ;;  %s1192_s9 = int_to_ptr.vmem [resolvable:$true] %s1191_s9 }
 0x263   : > { %s1162_s21 = scalar_lea.sflag [#allocation9], %s2012_s12  ;;  %s1648_s5 = scalar_lea.vmem %s1192_s9, 16 }
 0x264   : > { %p1649_p13 = scmp.ne.s32.totalorder %s1192_s9, %s1648_s5  ;;  %s1814_s18 = smov [#allocation8]  }
 0x265   : > { %s1652_s7 = sshll.u32 %s1814_s18, 4  ;;  %s1653_s7 = int_to_ptr.vmem [resolvable:$false] %s1652_s7 }
 0x266   : > { %p1650_p0 = pnand %p1649_p13, %p2249_p8  ;;  %s1654_s11 = scalar_lea.vmem %s1653_s7, 32 }
 0x267   : > { %p1655_p4 = scmp.lt.s32.totalorder %s1192_s9, %s1653_s7  ;;  %p1656_p9 = scmp.lt.s32.totalorder %s1654_s11, %s1648_s5 }
 0x268   : > { %s2251_s16 = smov %s2250_s24  ;;  %s2157_s25 = scalar_lea.hbm %s2250_s24, %s1347_s10 }
 0x269   : > { %p1651_p1 = pneg %p1650_p0  ;;  %p1657_p11 = por %p1656_p9, %p1655_p4 }
 0x26b   : > { %p1658_p2 = pnand %p1657_p11, %p1651_p1 }
 0x26d   : > { %1661 = shalt.err (!%p1658_p2)
}
 0x26e   : > { %s1662_s12 = scalar_lea.hbm %s2157_s25, 16  ;;  %s1666_s30 = scalar_lea.hbm %s2251_s16, 64 }
 0x26f   : > { %p1663_p3 = scmp.ne.s32.totalorder %s2157_s25, %s1662_s12  ;;  %p1667_p7 = scmp.lt.u32.totalorder %s2157_s25, %s2251_s16 }
 0x270   : > { %p1668_p10 = scmp.lt.u32.totalorder %s1666_s30, %s1662_s12  ;;  %p1670_p13 = scmp.lt.u32.totalorder %s1662_s12, %s2157_s25 }
 0x271   : > { %p1664_p5 = pnand %p1663_p3, %p2249_p8 }
 0x272   : > { %p1669_p12 = por %p1668_p10, %p1667_p7 }
 0x273   : > { %p1665_p6 = pneg %p1664_p5 }
 0x274   : > { %p1671_p0 = por %p1670_p13, %p1669_p12 }
 0x276   : > { %p1672_p1 = pnand %p1671_p0, %p1665_p6 }
 0x278   : > { %1675 = shalt.err (!%p1672_p1)
}
 0x279   : > { %1459 = dma.vmem_to_hbm [thread:$0]  (%p2249_p8), %s1192_s9, 16, %s2157_s25, %s1162_s21  }
 0x27a PF: > { %s2252_s13 = sld [smem:[#allocation13_spill]]  ;;  %s2253_s8 = sld [smem:[#allocation17_spill]] }
 0x27b   : > { %p1475_p4 = scmp.ge.s32.totalorder %s1782_s29, 2 }
 0x280   : > { %s1203_s3 = sand.u32 1, %s2252_s13   ;;  %p2254_p9 = scmp.ne.s32.totalorder %s2253_s8, 0 }
 0x281   : > { %s1204_s24 = scalar_lea.sflag [#allocation5], %s1203_s3 }
 0x282   : > { %p1467_p11 = pnand %p1475_p4, %p2254_p9 }
 0x284   : > { %1729 = dma.done.wait (!%p1467_p11), %s1204_s24, 16  }
 0x285   : > { %1731 = vsyncadd (!%p1467_p11), %s1204_s24, 4294967280  ;;  %s1212_s5 = scalar_lea.sflag [#allocation9], %s1203_s3 }
 0x286   : > { %1733 = dma.done.wait (!%p1467_p11), %s1212_s5, 16  }
 0x287   : > { %1735 = vsyncadd (!%p1467_p11), %s1212_s5, 4294967280  ;;  %s23_s29 = sadd.s32 1, %s1782_s29   ;;  %s2255_s15 = sld [smem:[#allocation18_spill]] }
 0x288   : > { %p20_p2 = scmp.ge.s32.totalorder %s23_s29, 14   ;;  %s2256_s9 = sld [smem:[#allocation14_spill]] }
 0x289   : > { %s2257_s7 = sld [smem:[#allocation15_spill]]  ;;  %s2258_s11 = sld [smem:[#allocation16_spill]] }
 0x28a   : > { %s2259_s18 = smov %s1742_s19  ;;  %s2260_s19 = smov %s1746_s20 }
 0x28b   : > { %s2261_s20 = smov %s1954_s6  ;;  %s2262_s21 = smov %s1754_s22 }
 0x28c   : > { %s2264_s23 = smov %s1770_s26  ;;  %s2265_s24 = smov %s1774_s27 }
 0x28d   : > { %s2263_s22 = smov %s2255_s15  ;;  %s2266_s25 = smov %s1778_s28 }
 0x28e   : > { %s2267_s26 = smov %s2256_s9  ;;  %22 = sbr.rel (!%p20_p2) target bundleno = 13 (0xd), region = 156 }
 0x28f   : > { %s2268_s27 = smov %s2257_s7  ;;  %s2269_s28 = smov %s2258_s11 }
 0x295   :  { %1216 = vsyncpa [#allocation5], 1 }
 0x296   :  { %1218 = vsyncpa [#allocation5 + $0x1], 1 }
 0x297   :  { %1219 = vsyncpa [#allocation9], 1 }
 0x298   :  { %1221 = vsyncpa [#allocation9 + $0x1], 1 }
 0x299   :  { %1222 = vsyncpa [#allocation6], 1 }
 0x29a   :  { %1224 = vsyncpa [#allocation6 + $0x1], 1 }

</bundles_post_ra>
